<compile_context>
chip_gen: v5e
topology: v5e:2x2
jax: 0.10.0
libtpu: 0.0.40
codegen_flags: <defaults>
</compile_context>

<pallas_src>
import functools

import jax
import jax.numpy as jnp
from jax.experimental import pallas as pl
from jax.experimental.pallas import tpu as pltpu


def _dwconv_kernel(xp_ref, wdw_ref, wpw_ref, bias_ref, o_ref,
                   *, k, stride, th, w_out):
    """One (batch, H-tile) grid step.

    xp_ref  : (1, Hp, Wp, C_in)      zero-padded input image (whole, NHWC)
    wdw_ref : (k*k, C_in)   f32      depthwise taps, row t = u*k + v
    wpw_ref : (C_in, C_out) bf16     pointwise 1x1 weights (pre-transposed)
    bias_ref: (1, C_out)    f32      fused bias (b_dw @ W_pw + b_pw)
    o_ref   : (1, th, W_out, C_out)
    """
    row0 = pl.program_id(1) * (th * stride)  # first padded input row of this tile

    # ---- depthwise conv: k*k statically unrolled shifted MACs (VPU, f32) ----
    acc = None
    for u in range(k):
        for v in range(k):
            if stride == 1:
                win = xp_ref[0, pl.ds(row0 + u, th), pl.ds(v, w_out), :]
            else:
                # TODO(synk): phase-split W in the wrapper (pixel-unshuffle) so
                # stride>1 taps become contiguous loads; this fallback does a
                # strided value-slice (relayout) per tap.
                win = xp_ref[0, pl.ds(row0 + u, (th - 1) * stride + 1),
                             pl.ds(v, (w_out - 1) * stride + 1), :]
                win = jax.lax.slice(win, (0, 0, 0), win.shape,
                                    (stride, stride, 1))
            win = win.astype(jnp.float32)
            tap = wdw_ref[pl.ds(u * k + v, 1), :][None].astype(jnp.float32)
            contrib = win * tap                       # (th, w_out, C_in)
            acc = contrib if acc is None else acc + contrib

    # ---- pointwise 1x1 conv: one MXU matmul (bf16 operands, f32 acc) ----
    c_in = acc.shape[-1]
    g = acc.reshape(th * w_out, c_in).astype(wpw_ref.dtype)
    out = jnp.dot(g, wpw_ref[...], preferred_element_type=jnp.float32)
    out = out + bias_ref[...]
    o_ref[0] = out.reshape(th, w_out, -1).astype(o_ref.dtype)


def _pick_h_tile(h_out, w_out, c_in, c_out, itemsize=4, budget_bytes=2 << 20):
    """Largest divisor of h_out whose per-tile working set stays small,
    preferring >= 2 tiles so the grid pipelines and both v7x cores get work."""
    divs = [d for d in range(1, h_out + 1) if h_out % d == 0]
    per_row = w_out * (c_in + 2 * c_out) * itemsize  # f32 acc + double-buffered out
    fitting = [d for d in divs if d * per_row <= budget_bytes] or [1]
    multi = [d for d in fitting if h_out // d >= 2]
    return max(multi) if multi else max(fitting)


def depthwise_conv2d_nhwc(x_nhwc, params, *, stride=1, padding=1):
    """x_nhwc: (B, H, W, C_in) -> (B, H_out, W_out, C_out).  No layout transposes."""
    w_dw, b_dw = params["w_dw"], params["b_dw"]      # (C_in,1,k,k), (C_in,)
    w_pw, b_pw = params["w_pw"], params["b_pw"]      # (C_out,C_in,1,1), (C_out,)

    B, H, W, C_in = x_nhwc.shape
    C_out = w_pw.shape[0]
    k = w_dw.shape[-1]
    s, p = stride, padding
    H_out = (H + 2 * p - k) // s + 1
    W_out = (W + 2 * p - k) // s + 1
    Hp, Wp = H + 2 * p, W + 2 * p

    # TODO(synk): for very large H*W, tile the input with a (k-1)-row halo and
    # fuse the zero padding in-kernel instead of a materialized jnp.pad.
    xp = jnp.pad(x_nhwc, ((0, 0), (p, p), (p, p), (0, 0)))

    # Weight re-layouts (once under jit):
    #   depthwise taps: row t = u*k + v holds the per-channel scale for that tap.
    wdw_taps = jnp.transpose(w_dw[:, 0, :, :], (1, 2, 0)).reshape(k * k, C_in)
    #   pointwise 1x1 as a (C_in, C_out) matmul operand; depthwise bias folded in.
    wpw_f32 = jnp.transpose(w_pw[:, :, 0, 0])                       # (C_in, C_out)
    b_fused = (b_dw[None, :] @ wpw_f32 + b_pw[None, :]).astype(jnp.float32)
    wpw = wpw_f32.astype(jnp.bfloat16)    # bf16 MXU operands, f32 accumulation

    th = _pick_h_tile(H_out, W_out, C_in, C_out)
    nh = H_out // th

    kernel = functools.partial(_dwconv_kernel, k=k, stride=s, th=th, w_out=W_out)

    return pl.pallas_call(
        kernel,
        out_shape=jax.ShapeDtypeStruct((B, H_out, W_out, C_out), x_nhwc.dtype),
        grid_spec=pltpu.PrefetchScalarGridSpec(
            num_scalar_prefetch=0,
            grid=(B, nh),
            in_specs=[
                # Whole padded image; block index constant along h -> fetched
                # only once per batch element by the pipeline.
                pl.BlockSpec((1, Hp, Wp, C_in), lambda b, h: (b, 0, 0, 0)),
                pl.BlockSpec((k * k, C_in), lambda b, h: (0, 0)),     # dw taps
                pl.BlockSpec((C_in, C_out), lambda b, h: (0, 0)),     # pw weight (bf16)
                pl.BlockSpec((1, C_out), lambda b, h: (0, 0)),        # fused bias
            ],
            out_specs=pl.BlockSpec((1, th, W_out, C_out),
                                   lambda b, h: (b, h, 0, 0)),
        ),
        compiler_params=pltpu.CompilerParams(
            dimension_semantics=("parallel", "parallel")),
    )(xp, wdw_taps, wpw, b_fused)


@functools.partial(jax.jit, static_argnames=("stride", "padding"))
def depthwise_conv2d(x, params, *, stride=1, padding=1):
    """PyTorch-layout entry: x (B, C_in, H, W) -> (B, C_out, H_out, W_out).

    The NCHW<->NHWC transposes exist only to match the PyTorch interface; an
    NHWC model should call depthwise_conv2d_nhwc directly and pay zero layout
    passes (here the input transpose and pad fuse into one XLA copy pass).
    """
    x_nhwc = jnp.transpose(x, (0, 2, 3, 1))
    out = depthwise_conv2d_nhwc(x_nhwc, params, stride=stride, padding=padding)
    return jnp.transpose(out, (0, 3, 1, 2))


def init_params(key, dim_in, dim_out, kernel_size):
    """Conv2d-style init (uniform +-1/sqrt(fan_in))."""
    k1, k2, k3, k4 = jax.random.split(key, 4)
    fan_dw = 1 * kernel_size * kernel_size          # groups=dim_in -> in/groups = 1
    fan_pw = dim_in * 1 * 1
    b_dw = 1.0 / jnp.sqrt(fan_dw)
    b_pw = 1.0 / jnp.sqrt(fan_pw)
    return {
        "w_dw": jax.random.uniform(k1, (dim_in, 1, kernel_size, kernel_size),
                                   jnp.float32, -b_dw, b_dw),
        "b_dw": jax.random.uniform(k2, (dim_in,), jnp.float32, -b_dw, b_dw),
        "w_pw": jax.random.uniform(k3, (dim_out, dim_in, 1, 1),
                                   jnp.float32, -b_pw, b_pw),
        "b_pw": jax.random.uniform(k4, (dim_out,), jnp.float32, -b_pw, b_pw),
    }


def depthwise_conv2d_ref(x, params, *, stride=1, padding=1):
    """Pure-JAX reference matching the PyTorch module (NCHW, full f32)."""
    w_dw, b_dw = params["w_dw"], params["b_dw"]
    w_pw, b_pw = params["w_pw"], params["b_pw"]
    c_in = x.shape[1]
    y = jax.lax.conv_general_dilated(
        x, w_dw, window_strides=(stride, stride),
        padding=[(padding, padding), (padding, padding)],
        dimension_numbers=("NCHW", "OIHW", "NCHW"),
        feature_group_count=c_in)
    y = y + b_dw[None, :, None, None]
    z = jax.lax.conv_general_dilated(
        y, w_pw, window_strides=(1, 1), padding="VALID",
        dimension_numbers=("NCHW", "OIHW", "NCHW"))
    return z + b_pw[None, :, None, None]


if __name__ == "__main__":
    B, dim_in, dim_out = 2, 64, 128
    H = W = 16
    kernel_size, padding, stride = 3, 1, 1

    key = jax.random.PRNGKey(0)
    kx, kp = jax.random.split(key)
    x = jax.random.normal(kx, (B, dim_in, H, W), jnp.float32)
    params = init_params(kp, dim_in, dim_out, kernel_size)

    out = depthwise_conv2d(x, params, stride=stride, padding=padding)
    out = jax.block_until_ready(out)

    ref = depthwise_conv2d_ref(x, params, stride=stride, padding=padding)
    assert out.shape == ref.shape == (B, dim_out, H, W)
    # bf16 MXU operands + fused-bias sum reordering -> slightly loosened tolerance.
    assert jnp.allclose(out, ref, atol=3e-2, rtol=3e-2), float(
        jnp.max(jnp.abs(out - ref)))

    print("KERNEL_OK")
</pallas_src>

<mosaic_0001>
module attributes {stable_mosaic.version = 11 : i64} {
  func.func @_dwconv_kernel(%arg0: i32, %arg1: i32, %arg2: memref<1x18x18x64xf32, #tpu.memory_space<vmem>>, %arg3: memref<9x64xf32, #tpu.memory_space<vmem>>, %arg4: memref<64x128xbf16, #tpu.memory_space<vmem>>, %arg5: memref<1x128xf32, #tpu.memory_space<vmem>>, %arg6: memref<1x8x16x128xf32, #tpu.memory_space<vmem>>) attributes {dimension_semantics = [#tpu.dimension_semantics<parallel>, #tpu.dimension_semantics<parallel>], iteration_bounds = array<i64: 2, 2>, scalar_prefetch = 0 : i64, scratch_operands = 0 : i64, tpu.core_type = #tpu.core_type<tc>, window_params = [{transform_indices = @transform_0, window_bounds = array<i64: 1, 18, 18, 64>}, {pipeline_mode = #tpu.pipeline_mode<synchronous>, transform_indices = @transform_1, window_bounds = array<i64: 9, 64>}, {pipeline_mode = #tpu.pipeline_mode<synchronous>, transform_indices = @transform_2, window_bounds = array<i64: 64, 128>}, {pipeline_mode = #tpu.pipeline_mode<synchronous>, transform_indices = @transform_3, window_bounds = array<i64: 1, 128>}, {transform_indices = @transform_4, window_bounds = array<i64: 1, 8, 16, 128>}]} {
    %c8_i32 = arith.constant 8 : i32
    %0 = arith.muli %arg1, %c8_i32 : i32
    %c0_i32 = arith.constant 0 : i32
    %1 = arith.addi %0, %c0_i32 : i32
    %c0 = arith.constant 0 : index
    %2 = arith.index_cast %1 : i32 to index
    %c0_0 = arith.constant 0 : index
    %c0_1 = arith.constant 0 : index
    %3 = vector.load %arg2[%c0, %2, %c0_0, %c0_1] : memref<1x18x18x64xf32, #tpu.memory_space<vmem>>, vector<1x8x16x64xf32>
    %4 = vector.shape_cast %3 : vector<1x8x16x64xf32> to vector<8x16x64xf32>
    %c0_2 = arith.constant 0 : index
    %c0_3 = arith.constant 0 : index
    %5 = vector.load %arg3[%c0_2, %c0_3] : memref<9x64xf32, #tpu.memory_space<vmem>>, vector<1x64xf32>
    %6 = vector.shape_cast %5 : vector<1x64xf32> to vector<1x1x64xf32>
    %7 = vector.broadcast %6 : vector<1x1x64xf32> to vector<8x16x64xf32>
    %8 = arith.mulf %4, %7 : vector<8x16x64xf32>
    %c0_i32_4 = arith.constant 0 : i32
    %9 = arith.addi %0, %c0_i32_4 : i32
    %c0_5 = arith.constant 0 : index
    %10 = arith.index_cast %9 : i32 to index
    %c1 = arith.constant 1 : index
    %c0_6 = arith.constant 0 : index
    %11 = vector.load %arg2[%c0_5, %10, %c1, %c0_6] : memref<1x18x18x64xf32, #tpu.memory_space<vmem>>, vector<1x8x16x64xf32>
    %12 = vector.shape_cast %11 : vector<1x8x16x64xf32> to vector<8x16x64xf32>
    %c1_7 = arith.constant 1 : index
    %c0_8 = arith.constant 0 : index
    %13 = vector.load %arg3[%c1_7, %c0_8] : memref<9x64xf32, #tpu.memory_space<vmem>>, vector<1x64xf32>
    %14 = vector.shape_cast %13 : vector<1x64xf32> to vector<1x1x64xf32>
    %15 = vector.broadcast %14 : vector<1x1x64xf32> to vector<8x16x64xf32>
    %16 = arith.mulf %12, %15 : vector<8x16x64xf32>
    %17 = arith.addf %8, %16 : vector<8x16x64xf32>
    %c0_i32_9 = arith.constant 0 : i32
    %18 = arith.addi %0, %c0_i32_9 : i32
    %c0_10 = arith.constant 0 : index
    %19 = arith.index_cast %18 : i32 to index
    %c2 = arith.constant 2 : index
    %c0_11 = arith.constant 0 : index
    %20 = vector.load %arg2[%c0_10, %19, %c2, %c0_11] : memref<1x18x18x64xf32, #tpu.memory_space<vmem>>, vector<1x8x16x64xf32>
    %21 = vector.shape_cast %20 : vector<1x8x16x64xf32> to vector<8x16x64xf32>
    %c2_12 = arith.constant 2 : index
    %c0_13 = arith.constant 0 : index
    %22 = vector.load %arg3[%c2_12, %c0_13] : memref<9x64xf32, #tpu.memory_space<vmem>>, vector<1x64xf32>
    %23 = vector.shape_cast %22 : vector<1x64xf32> to vector<1x1x64xf32>
    %24 = vector.broadcast %23 : vector<1x1x64xf32> to vector<8x16x64xf32>
    %25 = arith.mulf %21, %24 : vector<8x16x64xf32>
    %26 = arith.addf %17, %25 : vector<8x16x64xf32>
    %c1_i32 = arith.constant 1 : i32
    %27 = arith.addi %0, %c1_i32 : i32
    %c0_14 = arith.constant 0 : index
    %28 = arith.index_cast %27 : i32 to index
    %c0_15 = arith.constant 0 : index
    %c0_16 = arith.constant 0 : index
    %29 = vector.load %arg2[%c0_14, %28, %c0_15, %c0_16] : memref<1x18x18x64xf32, #tpu.memory_space<vmem>>, vector<1x8x16x64xf32>
    %30 = vector.shape_cast %29 : vector<1x8x16x64xf32> to vector<8x16x64xf32>
    %c3 = arith.constant 3 : index
    %c0_17 = arith.constant 0 : index
    %31 = vector.load %arg3[%c3, %c0_17] : memref<9x64xf32, #tpu.memory_space<vmem>>, vector<1x64xf32>
    %32 = vector.shape_cast %31 : vector<1x64xf32> to vector<1x1x64xf32>
    %33 = vector.broadcast %32 : vector<1x1x64xf32> to vector<8x16x64xf32>
    %34 = arith.mulf %30, %33 : vector<8x16x64xf32>
    %35 = arith.addf %26, %34 : vector<8x16x64xf32>
    %c1_i32_18 = arith.constant 1 : i32
    %36 = arith.addi %0, %c1_i32_18 : i32
    %c0_19 = arith.constant 0 : index
    %37 = arith.index_cast %36 : i32 to index
    %c1_20 = arith.constant 1 : index
    %c0_21 = arith.constant 0 : index
    %38 = vector.load %arg2[%c0_19, %37, %c1_20, %c0_21] : memref<1x18x18x64xf32, #tpu.memory_space<vmem>>, vector<1x8x16x64xf32>
    %39 = vector.shape_cast %38 : vector<1x8x16x64xf32> to vector<8x16x64xf32>
    %c4 = arith.constant 4 : index
    %c0_22 = arith.constant 0 : index
    %40 = vector.load %arg3[%c4, %c0_22] : memref<9x64xf32, #tpu.memory_space<vmem>>, vector<1x64xf32>
    %41 = vector.shape_cast %40 : vector<1x64xf32> to vector<1x1x64xf32>
    %42 = vector.broadcast %41 : vector<1x1x64xf32> to vector<8x16x64xf32>
    %43 = arith.mulf %39, %42 : vector<8x16x64xf32>
    %44 = arith.addf %35, %43 : vector<8x16x64xf32>
    %c1_i32_23 = arith.constant 1 : i32
    %45 = arith.addi %0, %c1_i32_23 : i32
    %c0_24 = arith.constant 0 : index
    %46 = arith.index_cast %45 : i32 to index
    %c2_25 = arith.constant 2 : index
    %c0_26 = arith.constant 0 : index
    %47 = vector.load %arg2[%c0_24, %46, %c2_25, %c0_26] : memref<1x18x18x64xf32, #tpu.memory_space<vmem>>, vector<1x8x16x64xf32>
    %48 = vector.shape_cast %47 : vector<1x8x16x64xf32> to vector<8x16x64xf32>
    %c5 = arith.constant 5 : index
    %c0_27 = arith.constant 0 : index
    %49 = vector.load %arg3[%c5, %c0_27] : memref<9x64xf32, #tpu.memory_space<vmem>>, vector<1x64xf32>
    %50 = vector.shape_cast %49 : vector<1x64xf32> to vector<1x1x64xf32>
    %51 = vector.broadcast %50 : vector<1x1x64xf32> to vector<8x16x64xf32>
    %52 = arith.mulf %48, %51 : vector<8x16x64xf32>
    %53 = arith.addf %44, %52 : vector<8x16x64xf32>
    %c2_i32 = arith.constant 2 : i32
    %54 = arith.addi %0, %c2_i32 : i32
    %c0_28 = arith.constant 0 : index
    %55 = arith.index_cast %54 : i32 to index
    %c0_29 = arith.constant 0 : index
    %c0_30 = arith.constant 0 : index
    %56 = vector.load %arg2[%c0_28, %55, %c0_29, %c0_30] : memref<1x18x18x64xf32, #tpu.memory_space<vmem>>, vector<1x8x16x64xf32>
    %57 = vector.shape_cast %56 : vector<1x8x16x64xf32> to vector<8x16x64xf32>
    %c6 = arith.constant 6 : index
    %c0_31 = arith.constant 0 : index
    %58 = vector.load %arg3[%c6, %c0_31] : memref<9x64xf32, #tpu.memory_space<vmem>>, vector<1x64xf32>
    %59 = vector.shape_cast %58 : vector<1x64xf32> to vector<1x1x64xf32>
    %60 = vector.broadcast %59 : vector<1x1x64xf32> to vector<8x16x64xf32>
    %61 = arith.mulf %57, %60 : vector<8x16x64xf32>
    %62 = arith.addf %53, %61 : vector<8x16x64xf32>
    %c2_i32_32 = arith.constant 2 : i32
    %63 = arith.addi %0, %c2_i32_32 : i32
    %c0_33 = arith.constant 0 : index
    %64 = arith.index_cast %63 : i32 to index
    %c1_34 = arith.constant 1 : index
    %c0_35 = arith.constant 0 : index
    %65 = vector.load %arg2[%c0_33, %64, %c1_34, %c0_35] : memref<1x18x18x64xf32, #tpu.memory_space<vmem>>, vector<1x8x16x64xf32>
    %66 = vector.shape_cast %65 : vector<1x8x16x64xf32> to vector<8x16x64xf32>
    %c7 = arith.constant 7 : index
    %c0_36 = arith.constant 0 : index
    %67 = vector.load %arg3[%c7, %c0_36] : memref<9x64xf32, #tpu.memory_space<vmem>>, vector<1x64xf32>
    %68 = vector.shape_cast %67 : vector<1x64xf32> to vector<1x1x64xf32>
    %69 = vector.broadcast %68 : vector<1x1x64xf32> to vector<8x16x64xf32>
    %70 = arith.mulf %66, %69 : vector<8x16x64xf32>
    %71 = arith.addf %62, %70 : vector<8x16x64xf32>
    %c2_i32_37 = arith.constant 2 : i32
    %72 = arith.addi %0, %c2_i32_37 : i32
    %c0_38 = arith.constant 0 : index
    %73 = arith.index_cast %72 : i32 to index
    %c2_39 = arith.constant 2 : index
    %c0_40 = arith.constant 0 : index
    %74 = vector.load %arg2[%c0_38, %73, %c2_39, %c0_40] : memref<1x18x18x64xf32, #tpu.memory_space<vmem>>, vector<1x8x16x64xf32>
    %75 = vector.shape_cast %74 : vector<1x8x16x64xf32> to vector<8x16x64xf32>
    %c8 = arith.constant 8 : index
    %c0_41 = arith.constant 0 : index
    %76 = vector.load %arg3[%c8, %c0_41] : memref<9x64xf32, #tpu.memory_space<vmem>>, vector<1x64xf32>
    %77 = vector.shape_cast %76 : vector<1x64xf32> to vector<1x1x64xf32>
    %78 = vector.broadcast %77 : vector<1x1x64xf32> to vector<8x16x64xf32>
    %79 = arith.mulf %75, %78 : vector<8x16x64xf32>
    %80 = arith.addf %71, %79 : vector<8x16x64xf32>
    %81 = vector.shape_cast %80 : vector<8x16x64xf32> to vector<128x64xf32>
    %82 = arith.truncf %81 : vector<128x64xf32> to vector<128x64xbf16>
    %c0_42 = arith.constant 0 : index
    %c0_43 = arith.constant 0 : index
    %83 = vector.load %arg4[%c0_42, %c0_43] : memref<64x128xbf16, #tpu.memory_space<vmem>>, vector<64x128xbf16>
    %cst = arith.constant dense<0.000000e+00> : vector<128x128xf32>
    %84 = tpu.matmul %82, %83, %cst {dimension_numbers = #tpu.dot_dimension_numbers<[1], [0], [0], [1], [0, 0, 1, 1], [], []>} : vector<128x64xbf16>, vector<64x128xbf16>, vector<128x128xf32> -> vector<128x128xf32>
    %c0_44 = arith.constant 0 : index
    %c0_45 = arith.constant 0 : index
    %85 = vector.load %arg5[%c0_44, %c0_45] : memref<1x128xf32, #tpu.memory_space<vmem>>, vector<1x128xf32>
    %86 = vector.broadcast %85 : vector<1x128xf32> to vector<128x128xf32>
    %87 = arith.addf %84, %86 : vector<128x128xf32>
    %88 = vector.shape_cast %87 : vector<128x128xf32> to vector<8x16x128xf32>
    %c0_46 = arith.constant 0 : index
    %c0_47 = arith.constant 0 : index
    %c0_48 = arith.constant 0 : index
    %c0_49 = arith.constant 0 : index
    %89 = vector.load %arg6[%c0_46, %c0_47, %c0_48, %c0_49] : memref<1x8x16x128xf32, #tpu.memory_space<vmem>>, vector<1x8x16x128xf32>
    %90 = vector.shape_cast %89 : vector<1x8x16x128xf32> to vector<8x16x128xf32>
    %91 = vector.shape_cast %88 : vector<8x16x128xf32> to vector<1x8x16x128xf32>
    tpu.vector_store %arg6[%c0_46, %c0_47, %c0_48, %c0_49], %91 {strides = array<i32>} : memref<1x8x16x128xf32, #tpu.memory_space<vmem>>, vector<1x8x16x128xf32>,
    return
  }
  func.func @transform_0(%arg0: i32, %arg1: i32) -> (i32, i32, i32, i32) {
    %c0_i32 = arith.constant 0 : i32
    %c0_i32_0 = arith.constant 0 : i32
    %c0_i32_1 = arith.constant 0 : i32
    %c0_i32_2 = arith.constant 0 : i32
    return %arg0, %c0_i32, %c0_i32_0, %c0_i32_1 : i32, i32, i32, i32
  }
  func.func @transform_1(%arg0: i32, %arg1: i32) -> (i32, i32) {
    %c0_i32 = arith.constant 0 : i32
    %c0_i32_0 = arith.constant 0 : i32
    %c0_i32_1 = arith.constant 0 : i32
    return %c0_i32, %c0_i32_0 : i32, i32
  }
  func.func @transform_2(%arg0: i32, %arg1: i32) -> (i32, i32) {
    %c0_i32 = arith.constant 0 : i32
    %c0_i32_0 = arith.constant 0 : i32
    %c0_i32_1 = arith.constant 0 : i32
    return %c0_i32, %c0_i32_0 : i32, i32
  }
  func.func @transform_3(%arg0: i32, %arg1: i32) -> (i32, i32) {
    %c0_i32 = arith.constant 0 : i32
    %c0_i32_0 = arith.constant 0 : i32
    %c0_i32_1 = arith.constant 0 : i32
    return %c0_i32, %c0_i32_0 : i32, i32
  }
  func.func @transform_4(%arg0: i32, %arg1: i32) -> (i32, i32, i32, i32) {
    %c0_i32 = arith.constant 0 : i32
    %c0_i32_0 = arith.constant 0 : i32
    %c0_i32_1 = arith.constant 0 : i32
    return %arg0, %arg1, %c0_i32, %c0_i32_0 : i32, i32, i32, i32
  }
}

</mosaic_0001>

<bundles_post_ra>
// kernel: depthwise_conv2d.1
= control target key start
LH: loop header
LB: loop body
LE: loop exit
PB: predicated region body
PF: predicated region fallthrough
CT: control target
= control target key end

     0   :  { %9 = vsyncpa [#allocation3], 0  ;;  %s1904_s0 = inlined_call_operand.vmem [shape: f32[2,18,18,64], index: 0, kind: input, shape index: {}]   ;;  %s1905_s1 = inlined_call_operand.vmem [shape: f32[9,64], index: 1, kind: input, shape index: {}]   ;;  %s1906_s2 = inlined_call_operand.vmem [shape: bf16[64,128], index: 2, kind: input, shape index: {}]   ;;  %s1907_s3 = inlined_call_operand.vmem [shape: f32[1,128], index: 3, kind: input, shape index: {}]   ;;  %s1908_s4 = inlined_call_operand.hbm [shape: f32[2,16,16,128], index: 4, kind: output, shape index: {}]  }
   0x1   :  { %11 = vsyncpa [#allocation3 + $0x1], 0  ;;  %s1258_s15 = smov 0   ;;  %s1260_s16 = smov 0  }
   0x2   :  { %s1262_s17 = smov 0   ;;  %s1264_s18 = smov 0  }
   0x3   :  { %s1266_s19 = smov 0   ;;  %s1268_s20 = smov 0  }
   0x4   :  { %s1270_s21 = smov 0   ;;  %s1272_s22 = smov 0  }
   0x5 LB: > { %s894_s23 = sadd.s32 4294967295, %s1229_s22   ;;  %s895_s24 = sadd.s32 4294967294, %s1229_s22   ;;  %s1229_s22 = sphi %s1272_s22, %s17_s22   ;;  %s1225_s21 = sphi %s1270_s21, %s1968_s21   ;;  %s1221_s20 = sphi %s1268_s20, %s1967_s20   ;;  %s1217_s19 = sphi %s1266_s19, %s1966_s19   ;;  %s1213_s18 = sphi %s1264_s18, %s1965_s18   ;;  %s1209_s17 = sphi %s1262_s17, %s1964_s17   ;;  %s1205_s16 = sphi %s1260_s16, %s1963_s16   ;;  %s1201_s15 = sphi %s1258_s15, %s1962_s15  }
   0x6   : > { %s26_s25 = sadd.s32 1, %s1221_s20  ;;  %s29_s26 = sadd.s32 1, %s1225_s21 }
   0x7   : > { %p27_p0 = scmp.ge.s32.totalorder %s26_s25, 2  ;;  %p137_p1 = scmp.ne.s32.totalorder %s1209_s17, %s1205_s16 }
   0x8   : > { %p138_p2 = scmp.eq.s32.totalorder %s894_s23, 3  ;;  %p143_p5 = scmp.ne.s32.totalorder %s1205_s16, %s1201_s15 }
   0x9   : > { %s1970_s25 = smov (%p27_p0, %s26_s25), 0  ;;  %s1972_s26 = smov (!%p27_p0, %s29_s26), %s1225_s21 }
   0xa   : > { %s123_s27 = ssub.s32 %s1221_s20, %s1970_s25  ;;  %p1309_p3 = por %p138_p2, %p137_p1 }
   0xb   : > { %p31_p4 = scmp.ge.s32.totalorder %s1972_s26, 2  ;;  %p144_p6 = scmp.eq.s32.totalorder %s895_s24, 3 }
   0xc   : > { %p898_p7 = scmp.ge.s32.totalorder %s1229_s22, 1  ;;  %p179_p9 = scmp.lt.s32.totalorder %s1229_s22, 5 }
   0xd   : > { %s1974_s26 = smov (%p31_p4, %s1972_s26), 0  ;;  %p1318_p8 = por %p144_p6, %p143_p5 }
   0xe   : > { %s122_s30 = ssub.s32 %s1225_s21, %s1974_s26  ;;  %s127_s5 = sadd.s32 1, %s1209_s17 }
   0xf   : > { %s124_s6 = sor.u32 %s123_s27, %s122_s30  ;;  %p180_p10 = pnand %p898_p7, %p179_p9 }
  0x10   : > { %p125_p11 = scmp.eq.s32.totalorder %s124_s6, 0 }
  0x11   : > { %183 = sbr.rel (%p180_p10) target bundleno = 257 (0x101), region = 36 }
  0x12   : > { %s1327_s7 = scalar_select %p125_p11, %s1209_s17, %s127_s5  }
  0x16   : > { %v1037_v0 = vld [vmem:[%s1906_s2 + $0x18] sm:$0xff]  ;;  %p205_p12 = scmp.lt.s32.totalorder %s1217_s19, 1  ;;  %s902_s10 = smul.u32 192, %s1213_s18  ;;  %v1036_v1 = vld [vmem:[%s1906_s2 + $0x10] sm:$0xff]  ;;  %v1341_v2 = vld [vmem:[%s1905_s1] ss:$0 sm:$0xff] }
  0x17   : > { %728 = vmatpush.bf16.msra.mxu0 %v1037_v0  ;;  %1039 = vmatpush.bf16.msra.mxu1 %v1037_v0  ;;  %v1035_v3 = vld [vmem:[%s1906_s2 + $0x8] sm:$0xff]  ;;  %v1349_v4 = vld [vmem:[%s1905_s1 + $0x1] ss:$0 sm:$0xff]  ;;  %v1354_v5 = vld [vmem:[%s1905_s1 + $0x2] ss:$0 sm:$0xff]  ;;  %vm699_vm0 = vcmask 523264  }
  0x18   : > { %s206_s13 = scalar_select %p205_p12, %s1217_s19, 1  ;;  %1040 = vmatpush.bf16.msra.mxu2 %v1037_v0  ;;  %1041 = vmatpush.bf16.msra.mxu3 %v1037_v0  ;;  %v1359_v6 = vld [vmem:[%s1905_s1 + $0x3] ss:$0 sm:$0xff]  ;;  %v1367_v7 = vld [vmem:[%s1905_s1 + $0x4] ss:$0 sm:$0xff] }
  0x19   : > { %v1374_v8 = vld [vmem:[%s1905_s1 + $0x5] ss:$0 sm:$0xff]  ;;  %v1379_v9 = vld [vmem:[%s1905_s1 + $0x6] ss:$0 sm:$0xff]  ;;  %v1390_v14 = vld [vmem:[%s1905_s1 + $0x7] ss:$0 sm:$0xff] }
  0x1a   : > { %s1051_s30 = smul.u32 432, %s206_s13  ;;  %v1034_v10 = vld [vmem:[%s1906_s2] sm:$0xff]  ;;  %v1401_v21 = vld [vmem:[%s1905_s1 + $0x8] ss:$0 sm:$0xff]  ;;  %s202_s24 = sand.u32 1, %s1205_s16  }
  0x1b   : > { %729 = vmatpush.bf16.msra.mxu0 %v1036_v1  ;;  %1042 = vmatpush.bf16.msra.mxu1 %v1036_v1  ;;  %s899_s27 = sshll.u32 %s202_s24, 7  ;;  %s1030_s9 = sshll.u32 %s1217_s19, 5 }
  0x1c   : > { %s209_s13 = scalar_lea.vmem %s1904_s0, %s1051_s30  ;;  %1043 = vmatpush.bf16.msra.mxu2 %v1036_v1  ;;  %1044 = vmatpush.bf16.msra.mxu3 %v1036_v1  ;;  %s1840_s8 = scalar_lea.vmem [#allocation2], %s899_s27 }
  0x1d   : > { %s1369_s5 = scalar_lea.vmem %s209_s13, %s902_s10  ;;  %s1038_s30 = sshll.u32 %s1213_s18, 4 }
  0x1e   : > { %v215_v11 = vld [vmem:[%s1369_s5] sm:$0xff]  ;;  %v216_v12 = vld [vmem:[%s1369_s5 + $0x8] sm:$0xff]  ;;  %v1407_v25 = vld [vmem:[%s1369_s5 + $0x18] sm:$0xff]  ;;  %s802_s11 = sadd.s32 %s1038_s30, %s1030_s9  ;;  %s805_s13 = sshll.u32 %s1840_s8, 4  ;;  %s806_s13 = int_to_ptr.vmem [resolvable:$true] %s805_s13 }
  0x1f   : > { %v249_v13 = vld [vmem:[%s1369_s5 + $0x1] sm:$0xff]  ;;  %v233_v15 = vmul.f32 %v1341_v2, %v215_v11  ;;  %v234_v16 = vmul.f32 %v1341_v2, %v216_v12  ;;  %v250_v17 = vld [vmem:[%s1369_s5 + $0x9] sm:$0xff]  ;;  %730 = vmatpush.bf16.msra.mxu0 %v1035_v3  ;;  %1045 = vmatpush.bf16.msra.mxu1 %v1035_v3  ;;  %v1413_v27 = vld [vmem:[%s1369_s5 + $0x19] sm:$0xff]  ;;  %v370_v29 = vmul.f32 %v1359_v6, %v1407_v25  ;;  %s1031_s12 = sshll.u32 %s802_s11, 3  ;;  %s790_s18 = scalar_lea.sflag [#allocation3], %s202_s24 }
  0x20   : > { %v267_v18 = vmul.f32 %v1349_v4, %v249_v13  ;;  %v299_v19 = vld [vmem:[%s1369_s5 + $0x2] sm:$0xff]  ;;  %v300_v20 = vld [vmem:[%s1369_s5 + $0xa] sm:$0xff]  ;;  %v268_v22 = vmul.f32 %v1349_v4, %v250_v17  ;;  %1046 = vmatpush.bf16.msra.mxu2 %v1035_v3  ;;  %1047 = vmatpush.bf16.msra.mxu3 %v1035_v3  ;;  %v1423_v32 = vld [vmem:[%s1369_s5 + $0x1a] sm:$0xff]  ;;  %v420_v35 = vmul.f32 %v1367_v7, %v1413_v27  ;;  %s804_s23 = scalar_lea.hbm %s1908_s4, %s1031_s12  ;;  %s1155_s9 = scalar_lea.hbm %s1908_s4, 512 }
  0x21   : > { %v317_v23 = vmul.f32 %v1354_v5, %v299_v19  ;;  %v318_v24 = vmul.f32 %v1354_v5, %v300_v20  ;;  %v1410_v26 = vld [vmem:[%s1369_s5 + $0x20] sm:$0xff]  ;;  %v470_v37 = vmul.f32 %v1374_v8, %v1423_v32  ;;  %v1435_v38 = vld [vmem:[%s1369_s5 + $0x30] sm:$0xff]  ;;  %v1438_v39 = vld [vmem:[%s1369_s5 + $0x38] sm:$0xff]  ;;  %s807_s27 = sshll.u32 %s804_s23, 4  ;;  %s808_s27 = int_to_ptr.hbm [resolvable:$true] %s807_s27 }
  0x22   : > { %v283_v28 = vadd.f32 %v267_v18, %v233_v15  ;;  %v371_v30 = vmul.f32 %v1359_v6, %v1410_v26  ;;  %v1420_v31 = vld [vmem:[%s1369_s5 + $0x21] sm:$0xff]  ;;  %v284_v34 = vadd.f32 %v268_v22, %v234_v16  ;;  %v523_v42 = vmul.f32 %v1379_v9, %v1435_v38  ;;  %v1447_v44 = vld [vmem:[%s1369_s5 + $0x31] sm:$0xff]  ;;  %v1450_v45 = vld [vmem:[%s1369_s5 + $0x39] sm:$0xff]  ;;  %s1149_s19 = sshra.s32 %s808_s27, 4  ;;  %s1150_s19 = int_to_ptr.hbm [resolvable:$true] %s1149_s19 }
  0x23   : > { %v1426_v33 = vld [vmem:[%s1369_s5 + $0x22] sm:$0xff]  ;;  %v421_v36 = vmul.f32 %v1367_v7, %v1420_v31  ;;  %v524_v43 = vmul.f32 %v1379_v9, %v1438_v39  ;;  %731 = vmatpush.bf16.msra.mxu0 %v1034_v10  ;;  %1048 = vmatpush.bf16.msra.mxu1 %v1034_v10  ;;  %v573_v47 = vmul.f32 %v1390_v14, %v1447_v44  ;;  %v1457_v49 = vld [vmem:[%s1369_s5 + $0x32] sm:$0xff]  ;;  %v1460_v50 = vld [vmem:[%s1369_s5 + $0x3a] sm:$0xff]  ;;  %p1156_p2 = scmp.lt.s32.totalorder %s1150_s19, %s1908_s4 }
  0x24   : > { %v333_v40 = vadd.f32 %v317_v23, %v283_v28  ;;  %v471_v41 = vmul.f32 %v1374_v8, %v1426_v33  ;;  %v334_v46 = vadd.f32 %v318_v24, %v284_v34  ;;  %v574_v48 = vmul.f32 %v1390_v14, %v1450_v45  ;;  %1049 = vmatpush.bf16.msra.mxu2 %v1034_v10  ;;  %v1467_v54 = vld [vmem:[%s1369_s5 + $0x48] sm:$0xff]  ;;  %v1470_v55 = vld [vmem:[%s1369_s5 + $0x50] sm:$0xff]  ;;  %v1509_v28 = vld [vmem:[%s1369_s5 + $0x60] sm:$0xff] }
  0x25   : > { %1050 = vmatpush.bf16.msra.mxu3 %v1034_v10  ;;  %v623_v52 = vmul.f32 %v1401_v21, %v1457_v49  ;;  %v624_v53 = vmul.f32 %v1401_v21, %v1460_v50  ;;  %v237_v57 = vmul.f32 %v1341_v2, %v1435_v38  ;;  %v238_v58 = vmul.f32 %v1341_v2, %v1438_v39  ;;  %v1479_v60 = vld [vmem:[%s1369_s5 + $0x49] sm:$0xff]  ;;  %v1482_v61 = vld [vmem:[%s1369_s5 + $0x51] sm:$0xff] }
  0x26   : > { %v386_v51 = vadd.f32 %v370_v29, %v333_v40  ;;  %v387_v56 = vadd.f32 %v371_v30, %v334_v46  ;;  %v271_v59 = vmul.f32 %v1349_v4, %v1447_v44  ;;  %v272_v63 = vmul.f32 %v1349_v4, %v1450_v45  ;;  %v1491_v3 = vld [vmem:[%s1369_s5 + $0x4a] sm:$0xff]  ;;  %v1494_v10 = vld [vmem:[%s1369_s5 + $0x52] sm:$0xff] }
  0x27   : > { %v321_v0 = vmul.f32 %v1354_v5, %v1457_v49  ;;  %v322_v1 = vmul.f32 %v1354_v5, %v1460_v50  ;;  %v374_v13 = vmul.f32 %v1359_v6, %v1467_v54  ;;  %v375_v15 = vmul.f32 %v1359_v6, %v1470_v55  ;;  %v1512_v29 = vld [vmem:[%s1369_s5 + $0x68] sm:$0xff] }
  0x28   : > { %v436_v62 = vadd.f32 %v420_v35, %v386_v51  ;;  %v437_v11 = vadd.f32 %v421_v36, %v387_v56  ;;  %v287_v12 = vadd.f32 %v271_v59, %v237_v57  ;;  %v288_v17 = vadd.f32 %v272_v63, %v238_v58  ;;  %v1522_v40 = vld [vmem:[%s1369_s5 + $0x69] sm:$0xff] }
  0x29   : > { %v424_v18 = vmul.f32 %v1367_v7, %v1479_v60  ;;  %v425_v19 = vmul.f32 %v1367_v7, %v1482_v61  ;;  %v474_v23 = vmul.f32 %v1374_v8, %v1491_v3  ;;  %v475_v24 = vmul.f32 %v1374_v8, %v1494_v10  ;;  %v1529_v56 = vld [vmem:[%s1369_s5 + $0x62] sm:$0xff]  ;;  %v1532_v57 = vld [vmem:[%s1369_s5 + $0x6a] sm:$0xff] }
  0x2a   : > { %v486_v16 = vadd.f32 %v470_v37, %v436_v62  ;;  %v487_v20 = vadd.f32 %v471_v41, %v437_v11  ;;  %v337_v22 = vadd.f32 %v321_v0, %v287_v12  ;;  %v338_v34 = vadd.f32 %v322_v1, %v288_v17  ;;  %v1519_v37 = vld [vmem:[%s1369_s5 + $0x61] sm:$0xff]  ;;  %v1543_v12 = vld [vmem:[%s1369_s5 + $0x78] sm:$0xff] }
  0x2b   : > { %v527_v35 = vmul.f32 %v1379_v9, %v1509_v28  ;;  %v528_v36 = vmul.f32 %v1379_v9, %v1512_v29  ;;  %v577_v51 = vmul.f32 %v1390_v14, %v1519_v37  ;;  %v627_v62 = vmul.f32 %v1401_v21, %v1529_v56  ;;  %v1553_v17 = vld [vmem:[%s1369_s5 + $0x79] sm:$0xff] }
  0x2c   : > { %v539_v30 = vadd.f32 %v523_v42, %v486_v16  ;;  %v540_v41 = vadd.f32 %v524_v43, %v487_v20  ;;  %v390_v46 = vadd.f32 %v374_v13, %v337_v22  ;;  %v578_v42 = vmul.f32 %v1390_v14, %v1522_v40  ;;  %1934 = vst [vmem:[#allocation5_spill] sm:$0xff] %v1553_v17 }
  0x2d   : > { %v391_v59 = vadd.f32 %v375_v15, %v338_v34  ;;  %v628_v43 = vmul.f32 %v1401_v21, %v1532_v57  ;;  %v241_v1 = vmul.f32 %v1341_v2, %v1509_v28  ;;  %v242_v11 = vmul.f32 %v1341_v2, %v1512_v29 }
  0x2e   : > { %v589_v58 = vadd.f32 %v573_v47, %v539_v30  ;;  %v590_v63 = vadd.f32 %v574_v48, %v540_v41  ;;  %v440_v0 = vadd.f32 %v424_v18, %v390_v46  ;;  %v275_v15 = vmul.f32 %v1349_v4, %v1519_v37  ;;  %v1550_v48 = vld [vmem:[%s1369_s5 + $0x80] sm:$0xff] }
  0x2f   : > { %v441_v13 = vadd.f32 %v425_v19, %v391_v59  ;;  %v276_v16 = vmul.f32 %v1349_v4, %v1522_v40  ;;  %v325_v22 = vmul.f32 %v1354_v5, %v1529_v56  ;;  %v1560_v30 = vld [vmem:[%s1369_s5 + $0x81] sm:$0xff]  ;;  %v378_v46 = vmul.f32 %v1359_v6, %v1543_v12 }
  0x30   : > { %v639_v47 = vadd.f32 %v623_v52, %v589_v58  ;;  %v640_v18 = vadd.f32 %v624_v53, %v590_v63  ;;  %v490_v20 = vadd.f32 %v474_v23, %v440_v0  ;;  %v326_v52 = vmul.f32 %v1354_v5, %v1532_v57  ;;  %1935 = vst [vmem:[#allocation6_spill] sm:$0xff] %v1560_v30  ;;  %v1565_v58 = vld [vmem:[%s1369_s5 + $0x7a] sm:$0xff]  ;;  %v1568_v59 = vld [vmem:[%s1369_s5 + $0x82] sm:$0xff] }
  0x31   : > { %v491_v19 = vadd.f32 %v475_v24, %v441_v13  ;;  %v291_v34 = vadd.f32 %v275_v15, %v241_v1  ;;  %v292_v41 = vadd.f32 %v276_v16, %v242_v11  ;;  %1936 = vst [vmem:[#allocation7_spill] sm:$0xff] %v1565_v58  ;;  %v379_v63 = vmul.f32 %v1359_v6, %v1550_v48  ;;  %v1582_v16 = vld [vmem:[%s1369_s5 + $0x90] sm:$0xff] }
  0x32   : > { %1937 = vst [vmem:[#allocation8_spill] sm:$0xff] %v1568_v59  ;;  %v655_v53 = vpack.c.bf16 %v640_v18, %v639_v47  ;;  %v543_v23 = vadd.f32 %v527_v35, %v490_v20  ;;  %v428_v24 = vmul.f32 %v1367_v7, %v1553_v17  ;;  %v429_v13 = vmul.f32 %v1367_v7, %v1560_v30  ;;  %v1629_v30 = vld [vmem:[%s1369_s5 + $0xb1] sm:$0xff] }
  0x33   : > { %v544_v0 = vadd.f32 %v528_v36, %v491_v19  ;;  %v341_v1 = vadd.f32 %v325_v22, %v291_v34  ;;  %v342_v11 = vadd.f32 %v326_v52, %v292_v41  ;;  %v478_v35 = vmul.f32 %v1374_v8, %v1565_v58  ;;  %1938 = vst [vmem:[#allocation9_spill] sm:$0xff] %v1582_v16  ;;  %v1585_v22 = vld [vmem:[%s1369_s5 + $0x98] sm:$0xff]  ;;  %v1626_v58 = vld [vmem:[%s1369_s5 + $0xa9] sm:$0xff] }
  0x34   : > { %1019 = vmatmul.msk.bf16.vlgmr.msra.gmra.mxu0 %vm699_vm0, %v655_v53  ;;  %v593_v47 = vadd.f32 %v577_v51, %v543_v23  ;;  %v479_v15 = vmul.f32 %v1374_v8, %v1568_v59  ;;  %1939 = vst [vmem:[#allocation10_spill] sm:$0xff] %v1585_v22  ;;  %v531_v52 = vmul.f32 %v1379_v9, %v1582_v16  ;;  %v1590_v19 = vld [vmem:[%s1369_s5 + $0x91] sm:$0xff]  ;;  %v1593_v51 = vld [vmem:[%s1369_s5 + $0x99] sm:$0xff] }
  0x35   : > { %v594_v18 = vadd.f32 %v578_v42, %v544_v0  ;;  %v394_v36 = vadd.f32 %v378_v46, %v341_v1  ;;  %v395_v20 = vadd.f32 %v379_v63, %v342_v11  ;;  %1940 = vst [vmem:[#allocation11_spill] sm:$0xff] %v1593_v51  ;;  %v532_v41 = vmul.f32 %v1379_v9, %v1585_v22  ;;  %v1602_v53 = vld [vmem:[%s1369_s5 + $0x92] sm:$0xff]  ;;  %v1605_v1 = vld [vmem:[%s1369_s5 + $0x9a] sm:$0xff]  ;;  %v1610_v11 = vld [vmem:[%s1369_s5 + $0xa8] sm:$0xff] }
  0x36   : > { %v643_v34 = vadd.f32 %v627_v62, %v593_v47  ;;  %v581_v42 = vmul.f32 %v1390_v14, %v1590_v19  ;;  %v582_v46 = vmul.f32 %v1390_v14, %v1593_v51  ;;  %1941 = vst [vmem:[#allocation12_spill] sm:$0xff] %v1602_v53  ;;  %v631_v62 = vmul.f32 %v1401_v21, %v1602_v53 }
  0x37   : > { %v644_v23 = vadd.f32 %v628_v43, %v594_v18  ;;  %v444_v63 = vadd.f32 %v428_v24, %v394_v36  ;;  %v445_v0 = vadd.f32 %v429_v13, %v395_v20  ;;  %1942 = vst [vmem:[#allocation13_spill] sm:$0xff] %v1605_v1  ;;  %v245_v47 = vmul.f32 %v1341_v2, %v1582_v16  ;;  %v1621_v13 = vld [vmem:[%s1369_s5 + $0xb0] sm:$0xff] }
  0x38   : > { %1943 = vst [vmem:[#allocation14_spill] sm:$0xff] %v1610_v11  ;;  %v246_v59 = vmul.f32 %v1341_v2, %v1585_v22  ;;  %v279_v43 = vmul.f32 %v1349_v4, %v1590_v19  ;;  %v280_v24 = vmul.f32 %v1349_v4, %v1593_v51  ;;  %v329_v16 = vmul.f32 %v1354_v5, %v1602_v53 }
  0x39   : > { %1944 = vst [vmem:[#allocation15_spill] sm:$0xff] %v1621_v13  ;;  %v657_v18 = vpack.c.bf16 %v644_v23, %v643_v34  ;;  %v494_v36 = vadd.f32 %v478_v35, %v444_v63  ;;  %v495_v20 = vadd.f32 %v479_v15, %v445_v0  ;;  %v330_v51 = vmul.f32 %v1354_v5, %v1605_v1  ;;  %v1636_v34 = vld [vmem:[%s1369_s5 + $0xaa] sm:$0xff]  ;;  %v1639_v15 = vld [vmem:[%s1369_s5 + $0xb2] sm:$0xff] }
  0x3a   : > { %1945 = vst [vmem:[#allocation16_spill] sm:$0xff] %v1626_v58  ;;  %v295_v22 = vadd.f32 %v279_v43, %v245_v47  ;;  %v296_v17 = vadd.f32 %v280_v24, %v246_v59  ;;  %v382_v35 = vmul.f32 %v1359_v6, %v1610_v11  ;;  %v632_v59 = vmul.f32 %v1401_v21, %v1605_v1  ;;  %v1647_v47 = vld [vmem:[%s1369_s5 + $0xc0] sm:$0xff]  ;;  %v1650_v43 = vld [vmem:[%s1369_s5 + $0xc8] sm:$0xff] }
  0x3b   : > { %1946 = vst [vmem:[#allocation17_spill] sm:$0xff] %v1629_v30  ;;  %1021 = vmatmul.msk.bf16.vlgmr.msra.gmra.mxu1 %vm699_vm0, %v657_v18  ;;  %v547_v23 = vadd.f32 %v531_v52, %v494_v36  ;;  %v548_v63 = vadd.f32 %v532_v41, %v495_v20  ;;  %v383_v0 = vmul.f32 %v1359_v6, %v1621_v13  ;;  %v1657_v18 = vld [vmem:[%s1369_s5 + $0xc1] sm:$0xff]  ;;  %v1660_v41 = vld [vmem:[%s1369_s5 + $0xc9] sm:$0xff] }
  0x3c   : > { %1947 = vst [vmem:[#allocation18_spill] sm:$0xff] %v1639_v15  ;;  %v345_v24 = vadd.f32 %v329_v16, %v295_v22  ;;  %v346_v11 = vadd.f32 %v330_v51, %v296_v17  ;;  %v432_v53 = vmul.f32 %v1367_v7, %v1626_v58  ;;  %v433_v52 = vmul.f32 %v1367_v7, %v1629_v30  ;;  %v1667_v17 = vld [vmem:[%s1369_s5 + $0xc2] sm:$0xff] }
  0x3d   : > { %v597_v36 = vadd.f32 %v581_v42, %v547_v23  ;;  %v598_v20 = vadd.f32 %v582_v46, %v548_v63  ;;  %v482_v13 = vmul.f32 %v1374_v8, %v1636_v34  ;;  %v483_v16 = vmul.f32 %v1374_v8, %v1639_v15 }
  0x3e   : > { %v398_v22 = vadd.f32 %v382_v35, %v345_v24  ;;  %v399_v51 = vadd.f32 %v383_v0, %v346_v11  ;;  %v535_v30 = vmul.f32 %v1379_v9, %v1647_v47  ;;  %v536_v58 = vmul.f32 %v1379_v9, %v1650_v43  ;;  %v1682_v24 = vld [vmem:[%s1369_s5 + $0xca] sm:$0xff] }
  0x3f   : > { %v647_v1 = vadd.f32 %v631_v62, %v597_v36  ;;  %v648_v42 = vadd.f32 %v632_v59, %v598_v20  ;;  %v585_v46 = vmul.f32 %v1390_v14, %v1657_v18  ;;  %v586_v23 = vmul.f32 %v1390_v14, %v1660_v41 }
  0x40   : > { %v448_v63 = vadd.f32 %v432_v53, %v398_v22  ;;  %v449_v15 = vadd.f32 %v433_v52, %v399_v51  ;;  %v635_v35 = vmul.f32 %v1401_v21, %v1667_v17  ;;  %v235_v11 = vmul.f32 %v1341_v2, %v1407_v25 }
  0x41   : > { %v659_v0 = vpack.c.bf16 %v648_v42, %v647_v1  ;;  %v236_v62 = vmul.f32 %v1341_v2, %v1410_v26  ;;  %v269_v59 = vmul.f32 %v1349_v4, %v1413_v27  ;;  %v270_v36 = vmul.f32 %v1349_v4, %v1420_v31 }
  0x42   : > { %v498_v53 = vadd.f32 %v482_v13, %v448_v63  ;;  %v499_v52 = vadd.f32 %v483_v16, %v449_v15  ;;  %v319_v20 = vmul.f32 %v1354_v5, %v1423_v32  ;;  %v320_v25 = vmul.f32 %v1354_v5, %v1426_v33 }
  0x43   : > { %1023 = vmatmul.msk.bf16.vlgmr.msra.gmra.mxu2 %vm699_vm0, %v659_v0  ;;  %v285_v1 = vadd.f32 %v269_v59, %v235_v11  ;;  %v286_v22 = vadd.f32 %v270_v36, %v236_v62  ;;  %v372_v26 = vmul.f32 %v1359_v6, %v1435_v38  ;;  %v373_v27 = vmul.f32 %v1359_v6, %v1438_v39 }
  0x44   : > { %v551_v51 = vadd.f32 %v535_v30, %v498_v53  ;;  %v552_v31 = vadd.f32 %v536_v58, %v499_v52  ;;  %v636_v13 = vmul.f32 %v1401_v21, %v1682_v24  ;;  %v422_v32 = vmul.f32 %v1367_v7, %v1447_v44 }
  0x45   : > { %v335_v15 = vadd.f32 %v319_v20, %v285_v1  ;;  %v336_v33 = vadd.f32 %v320_v25, %v286_v22  ;;  %v423_v16 = vmul.f32 %v1367_v7, %v1450_v45  ;;  %v472_v42 = vmul.f32 %v1374_v8, %v1457_v49 }
  0x46   : > { %v601_v38 = vadd.f32 %v585_v46, %v551_v51  ;;  %v602_v63 = vadd.f32 %v586_v23, %v552_v31  ;;  %v473_v39 = vmul.f32 %v1374_v8, %v1460_v50  ;;  %v525_v30 = vmul.f32 %v1379_v9, %v1467_v54 }
  0x47   : > { %v388_v58 = vadd.f32 %v372_v26, %v335_v15  ;;  %v389_v11 = vadd.f32 %v373_v27, %v336_v33  ;;  %v526_v44 = vmul.f32 %v1379_v9, %v1470_v55  ;;  %v575_v0 = vmul.f32 %v1390_v14, %v1479_v60 }
  0x48   : > { %v651_v45 = vadd.f32 %v635_v35, %v601_v38  ;;  %v652_v62 = vadd.f32 %v636_v13, %v602_v63  ;;  %v576_v49 = vmul.f32 %v1390_v14, %v1482_v61  ;;  %v625_v46 = vmul.f32 %v1401_v21, %v1491_v3  ;;  %v1948_v38 = vld [vmem:[#allocation5_spill] sm:$0xff]  ;;  %v1949_v63 = vld [vmem:[#allocation6_spill] sm:$0xff] }
  0x49   : > { %v438_v50 = vadd.f32 %v422_v32, %v388_v58  ;;  %v439_v23 = vadd.f32 %v423_v16, %v389_v11  ;;  %v239_v59 = vmul.f32 %v1341_v2, %v1467_v54  ;;  %v240_v36 = vmul.f32 %v1341_v2, %v1470_v55  ;;  %v1950_v58 = vld [vmem:[#allocation7_spill] sm:$0xff] }
  0x4a   : > { %v661_v53 = vpack.c.bf16 %v652_v62, %v651_v45  ;;  %v273_v52 = vmul.f32 %v1349_v4, %v1479_v60  ;;  %v274_v35 = vmul.f32 %v1349_v4, %v1482_v61  ;;  %v323_v20 = vmul.f32 %v1354_v5, %v1491_v3 }
  0x4b   : > { %v488_v25 = vadd.f32 %v472_v42, %v438_v50  ;;  %v489_v1 = vadd.f32 %v473_v39, %v439_v23  ;;  %v626_v22 = vmul.f32 %v1401_v21, %v1494_v10  ;;  %v324_v54 = vmul.f32 %v1354_v5, %v1494_v10  ;;  %v1951_v23 = vld [vmem:[#allocation8_spill] sm:$0xff] }
  0x4c   : > { %1025 = vmatmul.msk.bf16.vlgmr.msra.gmra.mxu3 %vm699_vm0, %v661_v53  ;;  %v289_v55 = vadd.f32 %v273_v52, %v239_v59  ;;  %v290_v26 = vadd.f32 %v274_v35, %v240_v36  ;;  %v376_v60 = vmul.f32 %v1359_v6, %v1509_v28  ;;  %v377_v61 = vmul.f32 %v1359_v6, %v1512_v29  ;;  %v1952_v52 = vld [vmem:[#allocation9_spill] sm:$0xff] }
  0x4d   : > { %v541_v27 = vadd.f32 %v525_v30, %v488_v25  ;;  %v542_v3 = vadd.f32 %v526_v44, %v489_v1  ;;  %v426_v51 = vmul.f32 %v1367_v7, %v1519_v37  ;;  %v427_v31 = vmul.f32 %v1367_v7, %v1522_v40  ;;  %v1953_v25 = vld [vmem:[#allocation10_spill] sm:$0xff] }
  0x4e   : > { %v339_v13 = vadd.f32 %v323_v20, %v289_v55  ;;  %v340_v10 = vadd.f32 %v324_v54, %v290_v26  ;;  %v476_v32 = vmul.f32 %v1374_v8, %v1529_v56  ;;  %v477_v15 = vmul.f32 %v1374_v8, %v1532_v57 }
  0x4f   : > { %v591_v28 = vadd.f32 %v575_v0, %v541_v27  ;;  %v592_v33 = vadd.f32 %v576_v49, %v542_v3  ;;  %v529_v29 = vmul.f32 %v1379_v9, %v1543_v12  ;;  %v530_v16 = vmul.f32 %v1379_v9, %v1550_v48  ;;  %v1955_v3 = vld [vmem:[#allocation12_spill] sm:$0xff] }
  0x50   : > { %v392_v37 = vadd.f32 %v376_v60, %v339_v13  ;;  %v393_v42 = vadd.f32 %v377_v61, %v340_v10  ;;  %v579_v40 = vmul.f32 %v1390_v14, %v1948_v38  ;;  %v580_v39 = vmul.f32 %v1390_v14, %v1949_v63  ;;  %v1954_v60 = vld [vmem:[#allocation11_spill] sm:$0xff]  ;;  %v1957_v10 = vld [vmem:[#allocation14_spill] sm:$0xff] }
  0x51   : > { %v641_v56 = vadd.f32 %v625_v46, %v591_v28  ;;  %v642_v30 = vadd.f32 %v626_v22, %v592_v33  ;;  %v629_v57 = vmul.f32 %v1401_v21, %v1950_v58  ;;  %v243_v11 = vmul.f32 %v1341_v2, %v1543_v12 }
  0x52   : > { %v442_v44 = vadd.f32 %v426_v51, %v392_v37  ;;  %v443_v0 = vadd.f32 %v427_v31, %v393_v42  ;;  %v244_v45 = vmul.f32 %v1341_v2, %v1550_v48  ;;  %v277_v62 = vmul.f32 %v1349_v4, %v1948_v38  ;;  %v1956_v31 = vld [vmem:[#allocation13_spill] sm:$0xff]  ;;  %v1959_v37 = vld [vmem:[#allocation16_spill] sm:$0xff] }
  0x53   : > { %v656_v49 = vpack.c.bf16 %v642_v30, %v641_v56  ;;  %v278_v50 = vmul.f32 %v1349_v4, %v1949_v63  ;;  %v327_v46 = vmul.f32 %v1354_v5, %v1950_v58  ;;  %v328_v59 = vmul.f32 %v1354_v5, %v1951_v23  ;;  %v1960_v38 = vld [vmem:[#allocation17_spill] sm:$0xff] }
  0x54   : > { %v492_v36 = vadd.f32 %v476_v32, %v442_v44  ;;  %v493_v12 = vadd.f32 %v477_v15, %v443_v0  ;;  %v293_v53 = vadd.f32 %v277_v62, %v243_v11  ;;  %v380_v35 = vmul.f32 %v1359_v6, %v1952_v52 }
  0x55   : > { %1020 = vmatmul.msk.bf16.gmra.mxu0 %vm699_vm0, %v656_v49  ;;  %v630_v48 = vmul.f32 %v1401_v21, %v1951_v23  ;;  %v294_v20 = vadd.f32 %v278_v50, %v244_v45  ;;  %v381_v1 = vmul.f32 %v1359_v6, %v1953_v25  ;;  %v430_v22 = vmul.f32 %v1367_v7, %v1590_v19  ;;  %v1958_v19 = vld [vmem:[#allocation15_spill] sm:$0xff]  ;;  %v1961_v50 = vld [vmem:[#allocation18_spill] sm:$0xff] }
  0x56   : > { %v545_v54 = vadd.f32 %v529_v29, %v492_v36  ;;  %v546_v55 = vadd.f32 %v530_v16, %v493_v12  ;;  %v343_v26 = vadd.f32 %v327_v46, %v293_v53  ;;  %v431_v61 = vmul.f32 %v1367_v7, %v1954_v60  ;;  %v986_v60 = vld [vmem:[%s1369_s5 + $0xe1] sm:$0xff] }
  0x57   : > { %v344_v27 = vadd.f32 %v328_v59, %v294_v20  ;;  %v480_v51 = vmul.f32 %v1374_v8, %v1955_v3  ;;  %v481_v13 = vmul.f32 %v1374_v8, %v1956_v31  ;;  %v533_v32 = vmul.f32 %v1379_v9, %v1957_v10  ;;  %v1001_v3 = vld [vmem:[%s1369_s5 + $0xda] sm:$0xff] }
  0x58   : > { %v595_v15 = vadd.f32 %v579_v40, %v545_v54  ;;  %v596_v28 = vadd.f32 %v580_v39, %v546_v55  ;;  %v396_v33 = vadd.f32 %v380_v35, %v343_v26  ;;  %v534_v29 = vmul.f32 %v1379_v9, %v1958_v19  ;;  %v985_v54 = vld [vmem:[%s1369_s5 + $0xd9] sm:$0xff] }
  0x59   : > { %v397_v16 = vadd.f32 %v381_v1, %v344_v27  ;;  %v583_v42 = vmul.f32 %v1390_v14, %v1959_v37  ;;  %v584_v63 = vmul.f32 %v1390_v14, %v1960_v38  ;;  %v633_v56 = vmul.f32 %v1401_v21, %v1636_v34  ;;  %v970_v1 = vld [vmem:[%s1369_s5 + $0xe0] sm:$0xff] }
  0x5a   : > { %v645_v30 = vadd.f32 %v629_v57, %v595_v15  ;;  %v646_v58 = vadd.f32 %v630_v48, %v596_v28  ;;  %v446_v11 = vadd.f32 %v430_v22, %v396_v33  ;;  %v247_v40 = vmul.f32 %v1341_v2, %v1957_v10  ;;  %v969_v48 = vld [vmem:[%s1369_s5 + $0xd8] sm:$0xff] }
  0x5b   : > { %v447_v39 = vadd.f32 %v431_v61, %v397_v16  ;;  %v248_v44 = vmul.f32 %v1341_v2, %v1958_v19  ;;  %v281_v0 = vmul.f32 %v1349_v4, %v1959_v37  ;;  %v282_v45 = vmul.f32 %v1349_v4, %v1960_v38 }
  0x5c   : > { %v658_v62 = vpack.c.bf16 %v646_v58, %v645_v30  ;;  %v496_v49 = vadd.f32 %v480_v51, %v446_v11  ;;  %v331_v57 = vmul.f32 %v1354_v5, %v1636_v34  ;;  %v332_v46 = vmul.f32 %v1354_v5, %v1961_v50  ;;  %v1002_v51 = vld [vmem:[%s1369_s5 + $0xe2] sm:$0xff]  ;;  %s1151_s5 = scalar_lea.hbm %s1150_s19, 128 }
  0x5d   : > { %v497_v23 = vadd.f32 %v481_v13, %v447_v39  ;;  %v297_v59 = vadd.f32 %v281_v0, %v247_v40  ;;  %v298_v36 = vadd.f32 %v282_v45, %v248_v44  ;;  %v384_v2 = vmul.f32 %v1359_v6, %v1647_v47  ;;  %p1152_p13 = scmp.ne.s32.totalorder %s1150_s19, %s1151_s5  ;;  %p1157_p4 = scmp.lt.s32.totalorder %s1155_s9, %s1151_s5 }
  0x5e   : > { %1022 = vmatmul.msk.bf16.gmra.mxu1 %vm699_vm0, %v658_v62  ;;  %v549_v12 = vadd.f32 %v533_v32, %v496_v49  ;;  %v634_v4 = vmul.f32 %v1401_v21, %v1961_v50  ;;  %v385_v34 = vmul.f32 %v1359_v6, %v1650_v43  ;;  %v434_v5 = vmul.f32 %v1367_v7, %v1657_v18 }
  0x5f   : > { %v550_v53 = vadd.f32 %v534_v29, %v497_v23  ;;  %v347_v52 = vadd.f32 %v331_v57, %v297_v59  ;;  %v348_v35 = vadd.f32 %v332_v46, %v298_v36  ;;  %v435_v47 = vmul.f32 %v1367_v7, %v1660_v41  ;;  %p1153_p0 = pnand %p1152_p13, %p1309_p3  ;;  %p1158_p5 = por %p1157_p4, %p1156_p2 }
  0x60   : > { %v599_v20 = vadd.f32 %v583_v42, %v549_v12  ;;  %v484_v25 = vmul.f32 %v1374_v8, %v1667_v17  ;;  %v485_v18 = vmul.f32 %v1374_v8, %v1682_v24  ;;  %v537_v26 = vmul.f32 %v1379_v9, %v969_v48 }
  0x61   : > { %v600_v22 = vadd.f32 %v584_v63, %v550_v53  ;;  %v400_v6 = vadd.f32 %v384_v2, %v347_v52  ;;  %v401_v43 = vadd.f32 %v385_v34, %v348_v35  ;;  %v538_v27 = vmul.f32 %v1379_v9, %v970_v1  ;;  %p1154_p1 = pneg %p1153_p0 }
  0x62   : > { %v649_v55 = vadd.f32 %v633_v56, %v599_v20  ;;  %v587_v17 = vmul.f32 %v1390_v14, %v985_v54  ;;  %v588_v8 = vmul.f32 %v1390_v14, %v986_v60  ;;  %v637_v15 = vmul.f32 %v1401_v21, %v1001_v3  ;;  %v1134_v14 = vld [vmem:[%s1907_s3] ss:$0 sm:$0xff] }
  0x63   : > { %v650_v7 = vadd.f32 %v634_v4, %v600_v22  ;;  %v450_v41 = vadd.f32 %v434_v5, %v400_v6  ;;  %v451_v61 = vadd.f32 %v435_v47, %v401_v43  ;;  %v638_v28 = vmul.f32 %v1401_v21, %v1002_v51  ;;  %p1159_p6 = pnand %p1158_p5, %p1154_p1 }
  0x65   : > { %v660_v31 = vpack.c.bf16 %v650_v7, %v649_v55  ;;  %v500_v13 = vadd.f32 %v484_v25, %v450_v41  ;;  %v501_v10 = vadd.f32 %v485_v18, %v451_v61 }
  0x67   : > { %1024 = vmatmul.msk.bf16.gmra.mxu2 %vm699_vm0, %v660_v31  ;;  %v553_v24 = vadd.f32 %v537_v26, %v500_v13  ;;  %v554_v32 = vadd.f32 %v538_v27, %v501_v10 }
  0x69   : > { %v603_v9 = vadd.f32 %v587_v17, %v553_v24  ;;  %v604_v33 = vadd.f32 %v588_v8, %v554_v32 }
  0x6b   : > { %v653_v19 = vadd.f32 %v637_v15, %v603_v9  ;;  %v654_v29 = vadd.f32 %v638_v28, %v604_v33 }
  0x6d   : > { %v662_v16 = vpack.c.bf16 %v654_v29, %v653_v19 }
  0x6f   : > { %1026 = vmatmul.msk.bf16.gmra.mxu3 %vm699_vm0, %v662_v16 }
  0xb1   : > { %v733_v37 = vpop.f32.mrf.mxu0 }
  0xb2   : > { %v734_v42 = vadd.f32 %v1134_v14, %v733_v37 }
  0xb4   : > { %773 = vst [vmem:[%s1840_s8] sm:$0xff] %v734_v42 }
  0xb8   : > { %v743_v21 = vpop.f32.mrf.mxu1 }
  0xb9   : > { %v744_v38 = vadd.f32 %v1134_v14, %v743_v21  ;;  %v735_v63 = vpop.f32.mrf.mxu0 }
  0xba   : > { %v736_v56 = vadd.f32 %v1134_v14, %v735_v63 }
  0xbb   : > { %777 = vst [vmem:[%s1840_s8 + $0x20] sm:$0xff] %v744_v38 }
  0xbc   : > { %774 = vst [vmem:[%s1840_s8 + $0x8] sm:$0xff] %v736_v56 }
  0xc0   : > { %v745_v30 = vpop.f32.mrf.mxu1 }
  0xc1   : > { %v746_v58 = vadd.f32 %v1134_v14, %v745_v30 }
  0xc3   : > { %778 = vst [vmem:[%s1840_s8 + $0x28] sm:$0xff] %v746_v58 }
  0xc6   : > { %v753_v11 = vpop.f32.mrf.mxu2 }
  0xc7   : > { %v754_v40 = vadd.f32 %v1134_v14, %v753_v11 }
  0xc9   : > { %781 = vst [vmem:[%s1840_s8 + $0x40] sm:$0xff] %v754_v40 }
  0xce   : > { %v755_v39 = vpop.f32.mrf.mxu2 }
  0xcf   : > { %v763_v44 = vpop.f32.mrf.mxu3  ;;  %v756_v0 = vadd.f32 %v1134_v14, %v755_v39 }
  0xd0   : > { %v764_v45 = vadd.f32 %v1134_v14, %v763_v44 }
  0xd1   : > { %782 = vst [vmem:[%s1840_s8 + $0x48] sm:$0xff] %v756_v0 }
  0xd2   : > { %785 = vst [vmem:[%s1840_s8 + $0x60] sm:$0xff] %v764_v45  ;;  %v738_v62 = vpop.f32.mrf.mxu0 }
  0xd3   : > { %v739_v49 = vadd.f32 %v1134_v14, %v738_v62 }
  0xd5   : > { %775 = vst [vmem:[%s1840_s8 + $0x10] sm:$0xff] %v739_v49 }
  0xd7   : > { %v765_v57 = vpop.f32.mrf.mxu3 }
  0xd8   : > { %v766_v50 = vadd.f32 %v1134_v14, %v765_v57 }
  0xda   : > { %786 = vst [vmem:[%s1840_s8 + $0x68] sm:$0xff] %v766_v50  ;;  %v740_v46 = vpop.f32.mrf.mxu0 }
  0xdb   : > { %v748_v23 = vpop.f32.mrf.mxu1  ;;  %v741_v59 = vadd.f32 %v1134_v14, %v740_v46 }
  0xdc   : > { %v749_v36 = vadd.f32 %v1134_v14, %v748_v23 }
  0xdd   : > { %776 = vst [vmem:[%s1840_s8 + $0x18] sm:$0xff] %v741_v59 }
  0xde   : > { %779 = vst [vmem:[%s1840_s8 + $0x30] sm:$0xff] %v749_v36 }
  0xe3   : > { %v750_v2 = vpop.f32.mrf.mxu1 }
  0xe4   : > { %v751_v12 = vadd.f32 %v1134_v14, %v750_v2 }
  0xe6   : > { %780 = vst [vmem:[%s1840_s8 + $0x38] sm:$0xff] %v751_v12 }
  0xea   : > { %v758_v4 = vpop.f32.mrf.mxu2 }
  0xeb   : > { %v759_v34 = vadd.f32 %v1134_v14, %v758_v4 }
  0xed   : > { %783 = vst [vmem:[%s1840_s8 + $0x50] sm:$0xff] %v759_v34 }
  0xf2   : > { %v768_v5 = vpop.f32.mrf.mxu3  ;;  %v760_v53 = vpop.f32.mrf.mxu2 }
  0xf3   : > { %v769_v52 = vadd.f32 %v1134_v14, %v768_v5  ;;  %v761_v35 = vadd.f32 %v1134_v14, %v760_v53 }
  0xf5   : > { %787 = vst [vmem:[%s1840_s8 + $0x70] sm:$0xff] %v769_v52 }
  0xf6   : > { %784 = vst [vmem:[%s1840_s8 + $0x58] sm:$0xff] %v761_v35 }
  0xfa   : > { %v770_v47 = vpop.f32.mrf.mxu3 }
  0xfb   : > { %v771_v48 = vadd.f32 %v1134_v14, %v770_v47 }
  0xfd   : > { %788 = vst [vmem:[%s1840_s8 + $0x78] sm:$0xff] %v771_v48 }
  0xfe   : > { %1162 = shalt.err (!%p1159_p6)
}
  0xff   : > { %s1231_s24 = smov 128   ;;  %s1232_s8 = smov 8  }
 0x100   : > { %1052 = dma.vmem_to_hbm [thread:$0]  (%p1309_p3), %s806_s13, 2048, %s808_s27, %s790_s18, %s1231_s24, %s1231_s24, %s1232_s8  }
 0x101 PF: > { %p1058_p7 = scmp.ge.s32.totalorder %s1229_s22, 2  ;;  %s822_s10 = sand.u32 1, %s1201_s15  }
 0x102   : > { %s823_s14 = scalar_lea.sflag [#allocation3], %s822_s10 }
 0x103   : > { %p1055_p9 = pnand %p1058_p7, %p1318_p8 }
 0x105   : > { %p1056_p10 = pneg %p1055_p9 }
 0x107   : > { %1196 = dma.done.wait (%p1056_p10), %s823_s14, 2048  }
 0x108   : > { %1198 = vsyncadd (%p1056_p10), %s823_s14, 4294965248  ;;  %s17_s22 = sadd.s32 1, %s1229_s22   ;;  %s1962_s15 = smov %s1205_s16 }
 0x109   : > { %p14_p11 = scmp.ge.s32.totalorder %s17_s22, 6   ;;  %s1963_s16 = smov %s1209_s17 }
 0x10a   : > { %s1964_s17 = smov %s1327_s7  ;;  %s1965_s18 = smov %s1221_s20 }
 0x10b   : > { %s1966_s19 = smov %s1225_s21  ;;  %s1967_s20 = smov %s1970_s25 }
 0x10c   : > { %s1968_s21 = smov %s1974_s26  ;;  %16 = sbr.rel (!%p14_p11) target bundleno = 5 (0x5), region = 74 }
 0x111   :  { %829 = vsyncpa [#allocation3], 1 }
 0x112   :  { %831 = vsyncpa [#allocation3 + $0x1], 1 }

</bundles_post_ra>
